<compile_context>
chip_gen: v7x
topology: tpu7x:2x2x1
jax: 0.10.0
libtpu: 0.0.40
codegen_flags: <defaults>
</compile_context>

<pallas_src>
import functools
import math

import jax
import jax.numpy as jnp
from jax import lax
from jax.experimental import pallas as pl
from jax.experimental.pallas import tpu as pltpu

LANE = 128
# (2048, 128) f32 tile = 1 MiB; 2 inputs x 2 pipeline buffers = 4 MiB VMEM,
# comfortably inside the default scoped-VMEM limit on v5e/v6e/v7x.
MAX_BLK_ROWS = 2048


def _dice_partials_kernel(logits_ref, target_ref, out_ref, *,
                          thr_logit, n_valid, has_tail, is_float_target):
    """Per-block partial sums [intersection, sum(pred_bin), sum(target)].

    Each grid step writes an (8, 128) vector partial for each of the three
    sums into its own output block; the final reduction happens in JAX.
    """
    blk_rows, lane = logits_ref.shape
    i = pl.program_id(0)

    # sigmoid(x) > thr  <=>  x > logit(thr)   (sigmoid is strictly monotonic)
    pb = (logits_ref[...] > thr_logit).astype(jnp.float32)

    t = target_ref[...]
    if is_float_target:
        # torch `.to(torch.uint8)` truncates toward zero.
        tb = t.astype(jnp.int32).astype(jnp.float32)
    else:
        tb = t.astype(jnp.float32)

    def _accum(pbf, tbf):
        inter = pbf * tbf

        def part(x):
            # (blk_rows, 128) -> (8, 128): pure vreg adds (no XLU, no scalars).
            return jnp.sum(x.reshape(blk_rows // 8, 8, lane), axis=0)

        out_ref[0, 0, :, :] = part(inter)
        out_ref[0, 1, :, :] = part(pbf)
        out_ref[0, 2, :, :] = part(tbf)

    if has_tail:
        nblocks = pl.num_programs(0)

        @pl.when(i < nblocks - 1)
        def _():
            _accum(pb, tb)

        @pl.when(i == nblocks - 1)
        def _():
            # Mask elements past the true length (padded / don't-care rows).
            row = lax.broadcasted_iota(jnp.int32, (blk_rows, lane), 0)
            col = lax.broadcasted_iota(jnp.int32, (blk_rows, lane), 1)
            gidx = (i * blk_rows + row) * lane + col
            mask = gidx < n_valid
            _accum(jnp.where(mask, pb, 0.0), jnp.where(mask, tb, 0.0))
    else:
        _accum(pb, tb)


def dice_with_logits_loss(preds, target, threshold, eps=1e-7):
    """preds (logits) and target: arrays of identical shape. Returns scalar loss."""
    assert preds.shape == target.shape
    n = math.prod(preds.shape)

    t = float(threshold)
    if t <= 0.0:
        thr_logit = float("-inf")   # sigmoid(x) > t is always true
    elif t >= 1.0:
        thr_logit = float("inf")    # sigmoid(x) > t is always false
    else:
        thr_logit = math.log(t / (1.0 - t))

    # Keep inputs in their native dtype (no f32 round-trips through HBM).
    if target.dtype == jnp.bool_:
        target = target.astype(jnp.uint8)
    is_float_target = jnp.issubdtype(target.dtype, jnp.floating)

    pf = preds.reshape(-1)
    tf = target.reshape(-1)

    rows_needed = pl.cdiv(n, LANE)
    if rows_needed <= MAX_BLK_ROWS:
        blk_rows = ((rows_needed + 7) // 8) * 8     # single full block, 8-aligned
        rows_alloc = blk_rows
    else:
        blk_rows = MAX_BLK_ROWS
        rows_alloc = rows_needed                    # last block may be partial (masked)

    pad = rows_alloc * LANE - n
    if pad:
        # Only hit when n is not a multiple of 128 (sub-row pad); padded values
        # are don't-care because the kernel masks by the true element count.
        pf = jnp.pad(pf, (0, pad))
        tf = jnp.pad(tf, (0, pad))

    pf = pf.reshape(rows_alloc, LANE)
    tf = tf.reshape(rows_alloc, LANE)

    nblocks = pl.cdiv(rows_alloc, blk_rows)
    has_tail = nblocks * blk_rows * LANE > n

    kernel = functools.partial(
        _dice_partials_kernel,
        thr_logit=thr_logit,
        n_valid=n,
        has_tail=has_tail,
        is_float_target=is_float_target,
    )

    partials = pl.pallas_call(
        kernel,
        out_shape=jax.ShapeDtypeStruct((nblocks, 3, 8, LANE), jnp.float32),
        grid_spec=pltpu.PrefetchScalarGridSpec(
            num_scalar_prefetch=0,
            grid=(nblocks,),
            in_specs=[
                pl.BlockSpec((blk_rows, LANE), lambda i: (i, 0)),
                pl.BlockSpec((blk_rows, LANE), lambda i: (i, 0)),
            ],
            out_specs=pl.BlockSpec((1, 3, 8, LANE), lambda i: (i, 0, 0, 0)),
        ),
        compiler_params=pltpu.CompilerParams(
            dimension_semantics=("parallel",)),  # independent blocks -> both TCs on v7x
    )(pf, tf)

    sums = jnp.sum(partials, axis=(0, 2, 3))     # tiny final reduction in JAX
    intersection, sum_pred, sum_target = sums[0], sums[1], sums[2]
    dice = 2.0 * intersection / (sum_pred + sum_target + eps)
    return 1.0 - dice


def _reference_loss(preds, target, threshold, eps=1e-7):
    p = jax.nn.sigmoid(preds.astype(jnp.float32))
    pbin = (p > threshold).astype(jnp.float32)
    t = target.astype(jnp.uint8).astype(jnp.float32)
    inter = jnp.sum(pbin * t)
    union = jnp.sum(pbin) + jnp.sum(t)
    return 1.0 - 2.0 * inter / (union + eps)


if __name__ == "__main__":
    key = jax.random.PRNGKey(0)
    k1, k2 = jax.random.split(key)

    B, C, H, W = 2, 4, 16, 16
    threshold = 0.5

    # Logits (preds) and a binary segmentation target, NCHW.
    preds = jax.random.normal(k1, (B, C, H, W), dtype=jnp.float32)
    target = (jax.random.uniform(k2, (B, C, H, W)) > 0.5).astype(jnp.float32)

    loss_fn = jax.jit(functools.partial(dice_with_logits_loss, threshold=threshold))
    loss = jax.block_until_ready(loss_fn(preds, target))

    ref = _reference_loss(preds, target, threshold)
    assert jnp.allclose(loss, ref, atol=1e-5, rtol=1e-5), (loss, ref)

    print("KERNEL_OK")
</pallas_src>

<mosaic_0001>
module attributes {stable_mosaic.version = 11 : i64} {
  func.func @_dice_partials_kernel(%arg0: i32, %arg1: memref<16x128xf32, #tpu.memory_space<vmem>>, %arg2: memref<16x128xf32, #tpu.memory_space<vmem>>, %arg3: memref<1x3x8x128xf32, #tpu.memory_space<vmem>>) attributes {dimension_semantics = [#tpu.dimension_semantics<parallel>], iteration_bounds = array<i64: 1>, scalar_prefetch = 0 : i64, scratch_operands = 0 : i64, tpu.core_type = #tpu.core_type<tc>, window_params = [{transform_indices = @transform_0, window_bounds = array<i64: 16, 128>}, {transform_indices = @transform_1, window_bounds = array<i64: 16, 128>}, {transform_indices = @transform_2, window_bounds = array<i64: 1, 3, 8, 128>}]} {
    %c0 = arith.constant 0 : index
    %c0_0 = arith.constant 0 : index
    %0 = vector.load %arg1[%c0, %c0_0] : memref<16x128xf32, #tpu.memory_space<vmem>>, vector<16x128xf32>
    %cst = arith.constant 0.000000e+00 : f32
    %1 = vector.broadcast %cst : f32 to vector<16x128xf32>
    %2 = arith.cmpf ogt, %0, %1 : vector<16x128xf32>
    %3 = arith.extui %2 : vector<16x128xi1> to vector<16x128xi32>
    %4 = arith.sitofp %3 : vector<16x128xi32> to vector<16x128xf32>
    %c0_1 = arith.constant 0 : index
    %c0_2 = arith.constant 0 : index
    %5 = vector.load %arg2[%c0_1, %c0_2] : memref<16x128xf32, #tpu.memory_space<vmem>>, vector<16x128xf32>
    %6 = arith.fptosi %5 : vector<16x128xf32> to vector<16x128xi32>
    %7 = arith.sitofp %6 : vector<16x128xi32> to vector<16x128xf32>
    %8 = arith.mulf %4, %7 : vector<16x128xf32>
    %9 = vector.shape_cast %8 : vector<16x128xf32> to vector<2x8x128xf32>
    %cst_3 = arith.constant dense<0.000000e+00> : vector<8x128xf32>
    %10 = vector.multi_reduction <add>, %9, %cst_3 [0] : vector<2x8x128xf32> to vector<8x128xf32>
    %c0_4 = arith.constant 0 : index
    %c0_5 = arith.constant 0 : index
    %c0_6 = arith.constant 0 : index
    %c0_7 = arith.constant 0 : index
    %11 = vector.load %arg3[%c0_4, %c0_5, %c0_6, %c0_7] : memref<1x3x8x128xf32, #tpu.memory_space<vmem>>, vector<1x1x8x128xf32>
    %12 = vector.shape_cast %11 : vector<1x1x8x128xf32> to vector<8x128xf32>
    %13 = vector.shape_cast %10 : vector<8x128xf32> to vector<1x1x8x128xf32>
    tpu.vector_store %arg3[%c0_4, %c0_5, %c0_6, %c0_7], %13 {strides = array<i32>} : memref<1x3x8x128xf32, #tpu.memory_space<vmem>>, vector<1x1x8x128xf32>,
    %14 = vector.shape_cast %4 : vector<16x128xf32> to vector<2x8x128xf32>
    %cst_8 = arith.constant dense<0.000000e+00> : vector<8x128xf32>
    %15 = vector.multi_reduction <add>, %14, %cst_8 [0] : vector<2x8x128xf32> to vector<8x128xf32>
    %c0_9 = arith.constant 0 : index
    %c1 = arith.constant 1 : index
    %c0_10 = arith.constant 0 : index
    %c0_11 = arith.constant 0 : index
    %16 = vector.load %arg3[%c0_9, %c1, %c0_10, %c0_11] : memref<1x3x8x128xf32, #tpu.memory_space<vmem>>, vector<1x1x8x128xf32>
    %17 = vector.shape_cast %16 : vector<1x1x8x128xf32> to vector<8x128xf32>
    %18 = vector.shape_cast %15 : vector<8x128xf32> to vector<1x1x8x128xf32>
    tpu.vector_store %arg3[%c0_9, %c1, %c0_10, %c0_11], %18 {strides = array<i32>} : memref<1x3x8x128xf32, #tpu.memory_space<vmem>>, vector<1x1x8x128xf32>,
    %19 = vector.shape_cast %7 : vector<16x128xf32> to vector<2x8x128xf32>
    %cst_12 = arith.constant dense<0.000000e+00> : vector<8x128xf32>
    %20 = vector.multi_reduction <add>, %19, %cst_12 [0] : vector<2x8x128xf32> to vector<8x128xf32>
    %c0_13 = arith.constant 0 : index
    %c2 = arith.constant 2 : index
    %c0_14 = arith.constant 0 : index
    %c0_15 = arith.constant 0 : index
    %21 = vector.load %arg3[%c0_13, %c2, %c0_14, %c0_15] : memref<1x3x8x128xf32, #tpu.memory_space<vmem>>, vector<1x1x8x128xf32>
    %22 = vector.shape_cast %21 : vector<1x1x8x128xf32> to vector<8x128xf32>
    %23 = vector.shape_cast %20 : vector<8x128xf32> to vector<1x1x8x128xf32>
    tpu.vector_store %arg3[%c0_13, %c2, %c0_14, %c0_15], %23 {strides = array<i32>} : memref<1x3x8x128xf32, #tpu.memory_space<vmem>>, vector<1x1x8x128xf32>,
    return
  }
  func.func @transform_0(%arg0: i32) -> (i32, i32) {
    %c0_i32 = arith.constant 0 : i32
    %c0_i32_0 = arith.constant 0 : i32
    return %arg0, %c0_i32 : i32, i32
  }
  func.func @transform_1(%arg0: i32) -> (i32, i32) {
    %c0_i32 = arith.constant 0 : i32
    %c0_i32_0 = arith.constant 0 : i32
    return %arg0, %c0_i32 : i32, i32
  }
  func.func @transform_2(%arg0: i32) -> (i32, i32, i32, i32) {
    %c0_i32 = arith.constant 0 : i32
    %c0_i32_0 = arith.constant 0 : i32
    %c0_i32_1 = arith.constant 0 : i32
    %c0_i32_2 = arith.constant 0 : i32
    return %arg0, %c0_i32, %c0_i32_0, %c0_i32_1 : i32, i32, i32, i32
  }
}

</mosaic_0001>

<bundles_post_ra>
// kernel: dice_with_logits_loss.1
= control target key start
LH: loop header
LB: loop body
LE: loop exit
PB: predicated region body
PF: predicated region fallthrough
CT: control target
= control target key end

     0   :  { %v48_v5 = vmov 0.0   ;;  %s85_s0 = inlined_call_operand.vmem [shape: f32[16,128], index: 0, kind: input, shape index: {}]   ;;  %s86_s1 = inlined_call_operand.vmem [shape: f32[16,128], index: 1, kind: input, shape index: {}]   ;;  %s87_s2 = inlined_call_operand.vmem [shape: f32[1,3,8,128], index: 2, kind: output, shape index: {}]  }
   0x1   :  { %v11_v0 = vld [vmem:[%s85_s0] sm:$0xff]  ;;  %v12_v1 = vld [vmem:[%s85_s0 + $0x8] sm:$0xff] }
   0x2   :  { %v19_v2 = vld [vmem:[%s86_s1] sm:$0xff]  ;;  %vm13_vm0 = vcmp.gt.f32.partialorder %v11_v0, 0.0  ;;  %vm14_vm1 = vcmp.gt.f32.partialorder %v12_v1, 0.0  ;;  %v20_v3 = vld [vmem:[%s86_s1 + $0x8] sm:$0xff] }
   0x3   :  { %v43_v4 = vtrunc.f32 %v19_v2  ;;  %v39_v6 = vsel %vm13_vm0, 1.0, %v48_v5  ;;  %v40_v7 = vsel %vm14_vm1, 1.0, %v48_v5  ;;  %v45_v8 = vtrunc.f32 %v20_v3 }
   0x4   :  { %v29_v10 = vadd.f32 %v40_v7, %v39_v6 }
   0x5   :  { %v44_v9 = vcvt.f32.s32 %v43_v4  ;;  %v46_v11 = vcvt.f32.s32 %v45_v8 }
   0x6   :  { %41 = vst [vmem:[%s87_s2 + $0x8] sm:$0xff] %v29_v10 }
   0x7   :  { %v23_v12 = vcvt.s32.f32 %v44_v9  ;;  %v24_v13 = vcvt.s32.f32 %v46_v11 }
   0x9   :  { %v25_v14 = vmul.f32 %v39_v6, %v23_v12  ;;  %v26_v15 = vmul.f32 %v40_v7, %v24_v13  ;;  %v32_v16 = vadd.f32 %v24_v13, %v23_v12 }
   0xb   :  { %v27_v17 = vadd.f32 %v26_v15, %v25_v14  ;;  %42 = vst [vmem:[%s87_s2 + $0x10] sm:$0xff] %v32_v16 }
   0xd   :  { %28 = vst [vmem:[%s87_s2] sm:$0xff] %v27_v17 }

</bundles_post_ra>
